<compile_context>
chip_gen: v7x
topology: tpu7x:2x2x1
jax: 0.10.0
libtpu: 0.0.40
codegen_flags: <defaults>
</compile_context>

<pallas_src>
import functools

import jax
import jax.numpy as jnp
import numpy as np
from jax import lax
from jax.experimental import pallas as pl
from jax.experimental.pallas import tpu as pltpu


def _lstm_kernel(x_ref, h0_ref, c0_ref, wih_ref, whh_ref, b_ref,
                 out_ref, hn_ref, cn_ref, xproj_ref, *, B, T, H):
    # ---- Hoisted input projection (off the serial path) ------------------
    # Rows of x_ref are ordered t*B + b (time-major), so the reshape below is
    # a pure tile regrouping.  One MXU push + bias add for the whole sequence.
    # (K = I is tiny -> low MXU utilization, but it is one-time and off the
    #  recurrence chain; see review note about a VPU broadcast-FMA variant.)
    xproj = (jnp.dot(x_ref[...], wih_ref[...],
                     preferred_element_type=jnp.float32)
             + b_ref[...])                        # (T*B, 4H)
    # Time-major VMEM scratch: per-step read is a plain contiguous vld of B
    # sublanes at a tile-aligned offset, not a per-step sublane gather.
    xproj_ref[...] = xproj.reshape(T, B, 4 * H)   # (T, B, 4H), written once

    whh = whh_ref[...]                            # (H, 4H), loaded once
    h = h0_ref[...]                               # (B, H)
    c = c0_ref[...]                               # (B, H)

    # ---- Fully unrolled recurrence (T static & small) ---------------------
    # Unrolling exposes the whole chain to the scheduler so MXU/EUP/VPU/XLU
    # work of adjacent steps can overlap where data deps allow.
    # TODO(synk): for large T switch to lax.fori_loop(..., unroll=4..8) to
    # bound compile time and vreg live ranges (NOT back to grid=(T,)).
    for t in range(T):
        gates = xproj_ref[t] + jnp.dot(h, whh,
                                       preferred_element_type=jnp.float32)  # (B, 4H)

        # Two EUP passes over the full lane-dense (B, 4H) tile, then slice the
        # i/f/g/o lane quadrants (PyTorch gate order).
        sig = jax.nn.sigmoid(gates)               # (B, 4H)
        tnh = jnp.tanh(gates)                     # (B, 4H)

        i_g = sig[:, 0 * H:1 * H]
        f_g = sig[:, 1 * H:2 * H]
        g_g = tnh[:, 2 * H:3 * H]
        o_g = sig[:, 3 * H:4 * H]

        c = f_g * c + i_g * g_g
        h = o_g * jnp.tanh(c)

        # Time-major, contiguous 2-sublane VMEM store; off the dependent
        # chain.  The (T, B, H) slab is written back to HBM once at the end.
        out_ref[t] = h

    hn_ref[...] = h
    cn_ref[...] = c


def lstm_forward(x_btf, h0, c0, w_ih, w_hh, b_ih, b_hh):
    """x_btf: (B, T, I) float32 (batch_first).  Returns (out, (hn, cn)) with
    out: (B, T, H), hn/cn: (1, B, H) — matching PyTorch nn.LSTM outputs."""
    B, T, I = x_btf.shape
    H4 = w_ih.shape[0]
    H = H4 // 4

    # Time-major row order t*B + b so the in-kernel xproj scratch is a free
    # reshape and each step's read is a contiguous sublane block.  This tiny
    # wrapper transpose is layout plumbing, not hoisted compute.
    x_tm = jnp.transpose(x_btf, (1, 0, 2)).reshape(T * B, I)   # (T*B, I)
    wih_t = jnp.transpose(w_ih)                                # (I, 4H)
    whh_t = jnp.transpose(w_hh)                                # (H, 4H)
    bias = (b_ih + b_hh).reshape(1, 4 * H)                     # (1, 4H)
    h0_2d = h0.reshape(B, H)
    c0_2d = c0.reshape(B, H)

    kernel = functools.partial(_lstm_kernel, B=B, T=T, H=H)
    vmem_spec = pl.BlockSpec(memory_space=pltpu.MemorySpace.VMEM)

    # Gridless call: one invocation, all operands explicitly VMEM-resident
    # (DMA'd in/out exactly once).  Total VMEM footprint here is a few KiB;
    # for long sequences / big H this switches to a blocked-T pipeline, with
    # the xproj scratch being the term that hits v7x's 64 MiB first.
    out_tbh, hn, cn = pl.pallas_call(
        kernel,
        out_shape=(
            jax.ShapeDtypeStruct((T, B, H), jnp.float32),   # out (time-major)
            jax.ShapeDtypeStruct((B, H), jnp.float32),      # hn
            jax.ShapeDtypeStruct((B, H), jnp.float32),      # cn
        ),
        in_specs=[vmem_spec] * 6,
        out_specs=(vmem_spec, vmem_spec, vmem_spec),
        scratch_shapes=[pltpu.VMEM((T, B, 4 * H), jnp.float32)],
        compiler_params=pltpu.CompilerParams(
            vmem_limit_bytes=32 * 1024 * 1024),
    )(x_tm, h0_2d, c0_2d, wih_t, whh_t, bias)

    # Back to batch_first for the PyTorch-matching output.
    out_bth = jnp.transpose(out_tbh, (1, 0, 2))
    return out_bth, (hn[None, :, :], cn[None, :, :])


def lstm_reference(x_btf, h0, c0, w_ih, w_hh, b_ih, b_hh):
    """Pure-JAX reference of PyTorch nn.LSTM forward (batch_first, 1 layer)."""
    H = w_hh.shape[1]

    def step(carry, x_t):
        h, c = carry
        gates = x_t @ w_ih.T + b_ih + h @ w_hh.T + b_hh
        i = jax.nn.sigmoid(gates[:, 0 * H:1 * H])
        f = jax.nn.sigmoid(gates[:, 1 * H:2 * H])
        g = jnp.tanh(gates[:, 2 * H:3 * H])
        o = jax.nn.sigmoid(gates[:, 3 * H:4 * H])
        c = f * c + i * g
        h = o * jnp.tanh(c)
        return (h, c), h

    x_tbf = jnp.transpose(x_btf, (1, 0, 2))
    (hn, cn), out_tbh = lax.scan(step, (h0[0], c0[0]), x_tbf)
    return jnp.transpose(out_tbh, (1, 0, 2)), (hn[None], cn[None])


if __name__ == "__main__":
    # Module config: LSTM(input_size=4, hidden_size=32, batch_first=True)
    # bidirectional=False -> num_directions=1, hidden_size per direction = 32.
    B, T, I, H = 2, 8, 4, 32

    key = jax.random.PRNGKey(0)
    kx, kwih, kwhh, kbih, kbhh = jax.random.split(key, 5)

    x = jax.random.normal(kx, (B, T, I), dtype=jnp.float32)

    # Deterministic PyTorch-style init: U(-1/sqrt(H), 1/sqrt(H)).
    bound = 1.0 / np.sqrt(H)
    w_ih = jax.random.uniform(kwih, (4 * H, I), jnp.float32, -bound, bound)
    w_hh = jax.random.uniform(kwhh, (4 * H, H), jnp.float32, -bound, bound)
    b_ih = jax.random.uniform(kbih, (4 * H,), jnp.float32, -bound, bound)
    b_hh = jax.random.uniform(kbhh, (4 * H,), jnp.float32, -bound, bound)

    # INITIAL_STATE_0: zero initial hidden/cell state (num_directions=1).
    h0 = jnp.zeros((1, B, H), jnp.float32)
    c0 = jnp.zeros((1, B, H), jnp.float32)
    # TODO(synk): INITIAL_STATE_LEARNED (xavier-normal learned h0/c0) is just a
    # different h0/c0 input to the same kernel; not exercised here.

    out, (hn, cn) = lstm_forward(x, h0, c0, w_ih, w_hh, b_ih, b_hh)
    jax.block_until_ready((out, hn, cn))

    out_ref, (hn_ref, cn_ref) = lstm_reference(x, h0, c0, w_ih, w_hh, b_ih, b_hh)
    np.testing.assert_allclose(np.asarray(out), np.asarray(out_ref), rtol=1e-5, atol=1e-5)
    np.testing.assert_allclose(np.asarray(hn), np.asarray(hn_ref), rtol=1e-5, atol=1e-5)
    np.testing.assert_allclose(np.asarray(cn), np.asarray(cn_ref), rtol=1e-5, atol=1e-5)

    print("KERNEL_OK")
</pallas_src>

<mosaic_0001>
module attributes {stable_mosaic.version = 11 : i64} {
  func.func @_lstm_kernel(%arg0: memref<16x4xf32, #tpu.memory_space<vmem>>, %arg1: memref<2x32xf32, #tpu.memory_space<vmem>>, %arg2: memref<2x32xf32, #tpu.memory_space<vmem>>, %arg3: memref<4x128xf32, #tpu.memory_space<vmem>>, %arg4: memref<32x128xf32, #tpu.memory_space<vmem>>, %arg5: memref<1x128xf32, #tpu.memory_space<vmem>>, %arg6: memref<8x2x32xf32, #tpu.memory_space<vmem>>, %arg7: memref<2x32xf32, #tpu.memory_space<vmem>>, %arg8: memref<2x32xf32, #tpu.memory_space<vmem>>, %arg9: memref<8x2x128xf32, #tpu.memory_space<vmem>>) attributes {dimension_semantics = [], scalar_prefetch = 0 : i64, scratch_operands = 1 : i64, tpu.core_type = #tpu.core_type<tc>} {
    %c0 = arith.constant 0 : index
    %c0_0 = arith.constant 0 : index
    %0 = vector.load %arg0[%c0, %c0_0] : memref<16x4xf32, #tpu.memory_space<vmem>>, vector<16x4xf32>
    %c0_1 = arith.constant 0 : index
    %c0_2 = arith.constant 0 : index
    %1 = vector.load %arg3[%c0_1, %c0_2] : memref<4x128xf32, #tpu.memory_space<vmem>>, vector<4x128xf32>
    %cst = arith.constant dense<0.000000e+00> : vector<16x128xf32>
    %2 = tpu.matmul %0, %1, %cst {dimension_numbers = #tpu.dot_dimension_numbers<[1], [0], [0], [1], [0, 0, 1, 1], [], []>} : vector<16x4xf32>, vector<4x128xf32>, vector<16x128xf32> -> vector<16x128xf32>
    %c0_3 = arith.constant 0 : index
    %c0_4 = arith.constant 0 : index
    %3 = vector.load %arg5[%c0_3, %c0_4] : memref<1x128xf32, #tpu.memory_space<vmem>>, vector<1x128xf32>
    %4 = vector.broadcast %3 : vector<1x128xf32> to vector<16x128xf32>
    %5 = arith.addf %2, %4 : vector<16x128xf32>
    %6 = vector.shape_cast %5 : vector<16x128xf32> to vector<8x2x128xf32>
    %c0_5 = arith.constant 0 : index
    %c0_6 = arith.constant 0 : index
    %c0_7 = arith.constant 0 : index
    %7 = vector.load %arg9[%c0_5, %c0_6, %c0_7] : memref<8x2x128xf32, #tpu.memory_space<vmem>>, vector<8x2x128xf32>
    tpu.vector_store %arg9[%c0_5, %c0_6, %c0_7], %6 {strides = array<i32>} : memref<8x2x128xf32, #tpu.memory_space<vmem>>, vector<8x2x128xf32>,
    %c0_8 = arith.constant 0 : index
    %c0_9 = arith.constant 0 : index
    %8 = vector.load %arg4[%c0_8, %c0_9] : memref<32x128xf32, #tpu.memory_space<vmem>>, vector<32x128xf32>
    %c0_10 = arith.constant 0 : index
    %c0_11 = arith.constant 0 : index
    %9 = vector.load %arg1[%c0_10, %c0_11] : memref<2x32xf32, #tpu.memory_space<vmem>>, vector<2x32xf32>
    %c0_12 = arith.constant 0 : index
    %c0_13 = arith.constant 0 : index
    %10 = vector.load %arg2[%c0_12, %c0_13] : memref<2x32xf32, #tpu.memory_space<vmem>>, vector<2x32xf32>
    %c0_14 = arith.constant 0 : index
    %c0_15 = arith.constant 0 : index
    %c0_16 = arith.constant 0 : index
    %11 = vector.load %arg9[%c0_14, %c0_15, %c0_16] : memref<8x2x128xf32, #tpu.memory_space<vmem>>, vector<1x2x128xf32>
    %12 = vector.shape_cast %11 : vector<1x2x128xf32> to vector<2x128xf32>
    %cst_17 = arith.constant dense<0.000000e+00> : vector<2x128xf32>
    %13 = tpu.matmul %9, %8, %cst_17 {dimension_numbers = #tpu.dot_dimension_numbers<[1], [0], [0], [1], [0, 0, 1, 1], [], []>} : vector<2x32xf32>, vector<32x128xf32>, vector<2x128xf32> -> vector<2x128xf32>
    %14 = arith.addf %12, %13 : vector<2x128xf32>
    %15 = arith.negf %14 : vector<2x128xf32>
    %16 = math.exp %15 : vector<2x128xf32>
    %cst_18 = arith.constant 1.000000e+00 : f32
    %17 = vector.broadcast %cst_18 : f32 to vector<2x128xf32>
    %18 = arith.addf %17, %16 : vector<2x128xf32>
    %19 = arith.divf %17, %18 : vector<2x128xf32>
    %20 = math.tanh %14 : vector<2x128xf32>
    %21 = vector.extract_strided_slice %19 {offsets = [0, 0], sizes = [2, 32], strides = [1, 1]} : vector<2x128xf32> to vector<2x32xf32>
    %22 = vector.extract_strided_slice %19 {offsets = [0, 32], sizes = [2, 32], strides = [1, 1]} : vector<2x128xf32> to vector<2x32xf32>
    %23 = vector.extract_strided_slice %20 {offsets = [0, 64], sizes = [2, 32], strides = [1, 1]} : vector<2x128xf32> to vector<2x32xf32>
    %24 = vector.extract_strided_slice %19 {offsets = [0, 96], sizes = [2, 32], strides = [1, 1]} : vector<2x128xf32> to vector<2x32xf32>
    %25 = arith.mulf %22, %10 : vector<2x32xf32>
    %26 = arith.mulf %21, %23 : vector<2x32xf32>
    %27 = arith.addf %25, %26 : vector<2x32xf32>
    %28 = math.tanh %27 : vector<2x32xf32>
    %29 = arith.mulf %24, %28 : vector<2x32xf32>
    %c0_19 = arith.constant 0 : index
    %c0_20 = arith.constant 0 : index
    %c0_21 = arith.constant 0 : index
    %30 = vector.load %arg6[%c0_19, %c0_20, %c0_21] : memref<8x2x32xf32, #tpu.memory_space<vmem>>, vector<1x2x32xf32>
    %31 = vector.shape_cast %30 : vector<1x2x32xf32> to vector<2x32xf32>
    %32 = vector.shape_cast %29 : vector<2x32xf32> to vector<1x2x32xf32>
    tpu.vector_store %arg6[%c0_19, %c0_20, %c0_21], %32 {strides = array<i32>} : memref<8x2x32xf32, #tpu.memory_space<vmem>>, vector<1x2x32xf32>,
    %c1 = arith.constant 1 : index
    %c0_22 = arith.constant 0 : index
    %c0_23 = arith.constant 0 : index
    %33 = vector.load %arg9[%c1, %c0_22, %c0_23] : memref<8x2x128xf32, #tpu.memory_space<vmem>>, vector<1x2x128xf32>
    %34 = vector.shape_cast %33 : vector<1x2x128xf32> to vector<2x128xf32>
    %cst_24 = arith.constant dense<0.000000e+00> : vector<2x128xf32>
    %35 = tpu.matmul %29, %8, %cst_24 {dimension_numbers = #tpu.dot_dimension_numbers<[1], [0], [0], [1], [0, 0, 1, 1], [], []>} : vector<2x32xf32>, vector<32x128xf32>, vector<2x128xf32> -> vector<2x128xf32>
    %36 = arith.addf %34, %35 : vector<2x128xf32>
    %37 = arith.negf %36 : vector<2x128xf32>
    %38 = math.exp %37 : vector<2x128xf32>
    %cst_25 = arith.constant 1.000000e+00 : f32
    %39 = vector.broadcast %cst_25 : f32 to vector<2x128xf32>
    %40 = arith.addf %39, %38 : vector<2x128xf32>
    %41 = arith.divf %39, %40 : vector<2x128xf32>
    %42 = math.tanh %36 : vector<2x128xf32>
    %43 = vector.extract_strided_slice %41 {offsets = [0, 0], sizes = [2, 32], strides = [1, 1]} : vector<2x128xf32> to vector<2x32xf32>
    %44 = vector.extract_strided_slice %41 {offsets = [0, 32], sizes = [2, 32], strides = [1, 1]} : vector<2x128xf32> to vector<2x32xf32>
    %45 = vector.extract_strided_slice %42 {offsets = [0, 64], sizes = [2, 32], strides = [1, 1]} : vector<2x128xf32> to vector<2x32xf32>
    %46 = vector.extract_strided_slice %41 {offsets = [0, 96], sizes = [2, 32], strides = [1, 1]} : vector<2x128xf32> to vector<2x32xf32>
    %47 = arith.mulf %44, %27 : vector<2x32xf32>
    %48 = arith.mulf %43, %45 : vector<2x32xf32>
    %49 = arith.addf %47, %48 : vector<2x32xf32>
    %50 = math.tanh %49 : vector<2x32xf32>
    %51 = arith.mulf %46, %50 : vector<2x32xf32>
    %c1_26 = arith.constant 1 : index
    %c0_27 = arith.constant 0 : index
    %c0_28 = arith.constant 0 : index
    %52 = vector.load %arg6[%c1_26, %c0_27, %c0_28] : memref<8x2x32xf32, #tpu.memory_space<vmem>>, vector<1x2x32xf32>
    %53 = vector.shape_cast %52 : vector<1x2x32xf32> to vector<2x32xf32>
    %54 = vector.shape_cast %51 : vector<2x32xf32> to vector<1x2x32xf32>
    tpu.vector_store %arg6[%c1_26, %c0_27, %c0_28], %54 {strides = array<i32>} : memref<8x2x32xf32, #tpu.memory_space<vmem>>, vector<1x2x32xf32>,
    %c2 = arith.constant 2 : index
    %c0_29 = arith.constant 0 : index
    %c0_30 = arith.constant 0 : index
    %55 = vector.load %arg9[%c2, %c0_29, %c0_30] : memref<8x2x128xf32, #tpu.memory_space<vmem>>, vector<1x2x128xf32>
    %56 = vector.shape_cast %55 : vector<1x2x128xf32> to vector<2x128xf32>
    %cst_31 = arith.constant dense<0.000000e+00> : vector<2x128xf32>
    %57 = tpu.matmul %51, %8, %cst_31 {dimension_numbers = #tpu.dot_dimension_numbers<[1], [0], [0], [1], [0, 0, 1, 1], [], []>} : vector<2x32xf32>, vector<32x128xf32>, vector<2x128xf32> -> vector<2x128xf32>
    %58 = arith.addf %56, %57 : vector<2x128xf32>
    %59 = arith.negf %58 : vector<2x128xf32>
    %60 = math.exp %59 : vector<2x128xf32>
    %cst_32 = arith.constant 1.000000e+00 : f32
    %61 = vector.broadcast %cst_32 : f32 to vector<2x128xf32>
    %62 = arith.addf %61, %60 : vector<2x128xf32>
    %63 = arith.divf %61, %62 : vector<2x128xf32>
    %64 = math.tanh %58 : vector<2x128xf32>
    %65 = vector.extract_strided_slice %63 {offsets = [0, 0], sizes = [2, 32], strides = [1, 1]} : vector<2x128xf32> to vector<2x32xf32>
    %66 = vector.extract_strided_slice %63 {offsets = [0, 32], sizes = [2, 32], strides = [1, 1]} : vector<2x128xf32> to vector<2x32xf32>
    %67 = vector.extract_strided_slice %64 {offsets = [0, 64], sizes = [2, 32], strides = [1, 1]} : vector<2x128xf32> to vector<2x32xf32>
    %68 = vector.extract_strided_slice %63 {offsets = [0, 96], sizes = [2, 32], strides = [1, 1]} : vector<2x128xf32> to vector<2x32xf32>
    %69 = arith.mulf %66, %49 : vector<2x32xf32>
    %70 = arith.mulf %65, %67 : vector<2x32xf32>
    %71 = arith.addf %69, %70 : vector<2x32xf32>
    %72 = math.tanh %71 : vector<2x32xf32>
    %73 = arith.mulf %68, %72 : vector<2x32xf32>
    %c2_33 = arith.constant 2 : index
    %c0_34 = arith.constant 0 : index
    %c0_35 = arith.constant 0 : index
    %74 = vector.load %arg6[%c2_33, %c0_34, %c0_35] : memref<8x2x32xf32, #tpu.memory_space<vmem>>, vector<1x2x32xf32>
    %75 = vector.shape_cast %74 : vector<1x2x32xf32> to vector<2x32xf32>
    %76 = vector.shape_cast %73 : vector<2x32xf32> to vector<1x2x32xf32>
    tpu.vector_store %arg6[%c2_33, %c0_34, %c0_35], %76 {strides = array<i32>} : memref<8x2x32xf32, #tpu.memory_space<vmem>>, vector<1x2x32xf32>,
    %c3 = arith.constant 3 : index
    %c0_36 = arith.constant 0 : index
    %c0_37 = arith.constant 0 : index
    %77 = vector.load %arg9[%c3, %c0_36, %c0_37] : memref<8x2x128xf32, #tpu.memory_space<vmem>>, vector<1x2x128xf32>
    %78 = vector.shape_cast %77 : vector<1x2x128xf32> to vector<2x128xf32>
    %cst_38 = arith.constant dense<0.000000e+00> : vector<2x128xf32>
    %79 = tpu.matmul %73, %8, %cst_38 {dimension_numbers = #tpu.dot_dimension_numbers<[1], [0], [0], [1], [0, 0, 1, 1], [], []>} : vector<2x32xf32>, vector<32x128xf32>, vector<2x128xf32> -> vector<2x128xf32>
    %80 = arith.addf %78, %79 : vector<2x128xf32>
    %81 = arith.negf %80 : vector<2x128xf32>
    %82 = math.exp %81 : vector<2x128xf32>
    %cst_39 = arith.constant 1.000000e+00 : f32
    %83 = vector.broadcast %cst_39 : f32 to vector<2x128xf32>
    %84 = arith.addf %83, %82 : vector<2x128xf32>
    %85 = arith.divf %83, %84 : vector<2x128xf32>
    %86 = math.tanh %80 : vector<2x128xf32>
    %87 = vector.extract_strided_slice %85 {offsets = [0, 0], sizes = [2, 32], strides = [1, 1]} : vector<2x128xf32> to vector<2x32xf32>
    %88 = vector.extract_strided_slice %85 {offsets = [0, 32], sizes = [2, 32], strides = [1, 1]} : vector<2x128xf32> to vector<2x32xf32>
    %89 = vector.extract_strided_slice %86 {offsets = [0, 64], sizes = [2, 32], strides = [1, 1]} : vector<2x128xf32> to vector<2x32xf32>
    %90 = vector.extract_strided_slice %85 {offsets = [0, 96], sizes = [2, 32], strides = [1, 1]} : vector<2x128xf32> to vector<2x32xf32>
    %91 = arith.mulf %88, %71 : vector<2x32xf32>
    %92 = arith.mulf %87, %89 : vector<2x32xf32>
    %93 = arith.addf %91, %92 : vector<2x32xf32>
    %94 = math.tanh %93 : vector<2x32xf32>
    %95 = arith.mulf %90, %94 : vector<2x32xf32>
    %c3_40 = arith.constant 3 : index
    %c0_41 = arith.constant 0 : index
    %c0_42 = arith.constant 0 : index
    %96 = vector.load %arg6[%c3_40, %c0_41, %c0_42] : memref<8x2x32xf32, #tpu.memory_space<vmem>>, vector<1x2x32xf32>
    %97 = vector.shape_cast %96 : vector<1x2x32xf32> to vector<2x32xf32>
    %98 = vector.shape_cast %95 : vector<2x32xf32> to vector<1x2x32xf32>
    tpu.vector_store %arg6[%c3_40, %c0_41, %c0_42], %98 {strides = array<i32>} : memref<8x2x32xf32, #tpu.memory_space<vmem>>, vector<1x2x32xf32>,
    %c4 = arith.constant 4 : index
    %c0_43 = arith.constant 0 : index
    %c0_44 = arith.constant 0 : index
    %99 = vector.load %arg9[%c4, %c0_43, %c0_44] : memref<8x2x128xf32, #tpu.memory_space<vmem>>, vector<1x2x128xf32>
    %100 = vector.shape_cast %99 : vector<1x2x128xf32> to vector<2x128xf32>
    %cst_45 = arith.constant dense<0.000000e+00> : vector<2x128xf32>
    %101 = tpu.matmul %95, %8, %cst_45 {dimension_numbers = #tpu.dot_dimension_numbers<[1], [0], [0], [1], [0, 0, 1, 1], [], []>} : vector<2x32xf32>, vector<32x128xf32>, vector<2x128xf32> -> vector<2x128xf32>
    %102 = arith.addf %100, %101 : vector<2x128xf32>
    %103 = arith.negf %102 : vector<2x128xf32>
    %104 = math.exp %103 : vector<2x128xf32>
    %cst_46 = arith.constant 1.000000e+00 : f32
    %105 = vector.broadcast %cst_46 : f32 to vector<2x128xf32>
    %106 = arith.addf %105, %104 : vector<2x128xf32>
    %107 = arith.divf %105, %106 : vector<2x128xf32>
    %108 = math.tanh %102 : vector<2x128xf32>
    %109 = vector.extract_strided_slice %107 {offsets = [0, 0], sizes = [2, 32], strides = [1, 1]} : vector<2x128xf32> to vector<2x32xf32>
    %110 = vector.extract_strided_slice %107 {offsets = [0, 32], sizes = [2, 32], strides = [1, 1]} : vector<2x128xf32> to vector<2x32xf32>
    %111 = vector.extract_strided_slice %108 {offsets = [0, 64], sizes = [2, 32], strides = [1, 1]} : vector<2x128xf32> to vector<2x32xf32>
    %112 = vector.extract_strided_slice %107 {offsets = [0, 96], sizes = [2, 32], strides = [1, 1]} : vector<2x128xf32> to vector<2x32xf32>
    %113 = arith.mulf %110, %93 : vector<2x32xf32>
    %114 = arith.mulf %109, %111 : vector<2x32xf32>
    %115 = arith.addf %113, %114 : vector<2x32xf32>
    %116 = math.tanh %115 : vector<2x32xf32>
    %117 = arith.mulf %112, %116 : vector<2x32xf32>
    %c4_47 = arith.constant 4 : index
    %c0_48 = arith.constant 0 : index
    %c0_49 = arith.constant 0 : index
    %118 = vector.load %arg6[%c4_47, %c0_48, %c0_49] : memref<8x2x32xf32, #tpu.memory_space<vmem>>, vector<1x2x32xf32>
    %119 = vector.shape_cast %118 : vector<1x2x32xf32> to vector<2x32xf32>
    %120 = vector.shape_cast %117 : vector<2x32xf32> to vector<1x2x32xf32>
    tpu.vector_store %arg6[%c4_47, %c0_48, %c0_49], %120 {strides = array<i32>} : memref<8x2x32xf32, #tpu.memory_space<vmem>>, vector<1x2x32xf32>,
    %c5 = arith.constant 5 : index
    %c0_50 = arith.constant 0 : index
    %c0_51 = arith.constant 0 : index
    %121 = vector.load %arg9[%c5, %c0_50, %c0_51] : memref<8x2x128xf32, #tpu.memory_space<vmem>>, vector<1x2x128xf32>
    %122 = vector.shape_cast %121 : vector<1x2x128xf32> to vector<2x128xf32>
    %cst_52 = arith.constant dense<0.000000e+00> : vector<2x128xf32>
    %123 = tpu.matmul %117, %8, %cst_52 {dimension_numbers = #tpu.dot_dimension_numbers<[1], [0], [0], [1], [0, 0, 1, 1], [], []>} : vector<2x32xf32>, vector<32x128xf32>, vector<2x128xf32> -> vector<2x128xf32>
    %124 = arith.addf %122, %123 : vector<2x128xf32>
    %125 = arith.negf %124 : vector<2x128xf32>
    %126 = math.exp %125 : vector<2x128xf32>
    %cst_53 = arith.constant 1.000000e+00 : f32
    %127 = vector.broadcast %cst_53 : f32 to vector<2x128xf32>
    %128 = arith.addf %127, %126 : vector<2x128xf32>
    %129 = arith.divf %127, %128 : vector<2x128xf32>
    %130 = math.tanh %124 : vector<2x128xf32>
    %131 = vector.extract_strided_slice %129 {offsets = [0, 0], sizes = [2, 32], strides = [1, 1]} : vector<2x128xf32> to vector<2x32xf32>
    %132 = vector.extract_strided_slice %129 {offsets = [0, 32], sizes = [2, 32], strides = [1, 1]} : vector<2x128xf32> to vector<2x32xf32>
    %133 = vector.extract_strided_slice %130 {offsets = [0, 64], sizes = [2, 32], strides = [1, 1]} : vector<2x128xf32> to vector<2x32xf32>
    %134 = vector.extract_strided_slice %129 {offsets = [0, 96], sizes = [2, 32], strides = [1, 1]} : vector<2x128xf32> to vector<2x32xf32>
    %135 = arith.mulf %132, %115 : vector<2x32xf32>
    %136 = arith.mulf %131, %133 : vector<2x32xf32>
    %137 = arith.addf %135, %136 : vector<2x32xf32>
    %138 = math.tanh %137 : vector<2x32xf32>
    %139 = arith.mulf %134, %138 : vector<2x32xf32>
    %c5_54 = arith.constant 5 : index
    %c0_55 = arith.constant 0 : index
    %c0_56 = arith.constant 0 : index
    %140 = vector.load %arg6[%c5_54, %c0_55, %c0_56] : memref<8x2x32xf32, #tpu.memory_space<vmem>>, vector<1x2x32xf32>
    %141 = vector.shape_cast %140 : vector<1x2x32xf32> to vector<2x32xf32>
    %142 = vector.shape_cast %139 : vector<2x32xf32> to vector<1x2x32xf32>
    tpu.vector_store %arg6[%c5_54, %c0_55, %c0_56], %142 {strides = array<i32>} : memref<8x2x32xf32, #tpu.memory_space<vmem>>, vector<1x2x32xf32>,
    %c6 = arith.constant 6 : index
    %c0_57 = arith.constant 0 : index
    %c0_58 = arith.constant 0 : index
    %143 = vector.load %arg9[%c6, %c0_57, %c0_58] : memref<8x2x128xf32, #tpu.memory_space<vmem>>, vector<1x2x128xf32>
    %144 = vector.shape_cast %143 : vector<1x2x128xf32> to vector<2x128xf32>
    %cst_59 = arith.constant dense<0.000000e+00> : vector<2x128xf32>
    %145 = tpu.matmul %139, %8, %cst_59 {dimension_numbers = #tpu.dot_dimension_numbers<[1], [0], [0], [1], [0, 0, 1, 1], [], []>} : vector<2x32xf32>, vector<32x128xf32>, vector<2x128xf32> -> vector<2x128xf32>
    %146 = arith.addf %144, %145 : vector<2x128xf32>
    %147 = arith.negf %146 : vector<2x128xf32>
    %148 = math.exp %147 : vector<2x128xf32>
    %cst_60 = arith.constant 1.000000e+00 : f32
    %149 = vector.broadcast %cst_60 : f32 to vector<2x128xf32>
    %150 = arith.addf %149, %148 : vector<2x128xf32>
    %151 = arith.divf %149, %150 : vector<2x128xf32>
    %152 = math.tanh %146 : vector<2x128xf32>
    %153 = vector.extract_strided_slice %151 {offsets = [0, 0], sizes = [2, 32], strides = [1, 1]} : vector<2x128xf32> to vector<2x32xf32>
    %154 = vector.extract_strided_slice %151 {offsets = [0, 32], sizes = [2, 32], strides = [1, 1]} : vector<2x128xf32> to vector<2x32xf32>
    %155 = vector.extract_strided_slice %152 {offsets = [0, 64], sizes = [2, 32], strides = [1, 1]} : vector<2x128xf32> to vector<2x32xf32>
    %156 = vector.extract_strided_slice %151 {offsets = [0, 96], sizes = [2, 32], strides = [1, 1]} : vector<2x128xf32> to vector<2x32xf32>
    %157 = arith.mulf %154, %137 : vector<2x32xf32>
    %158 = arith.mulf %153, %155 : vector<2x32xf32>
    %159 = arith.addf %157, %158 : vector<2x32xf32>
    %160 = math.tanh %159 : vector<2x32xf32>
    %161 = arith.mulf %156, %160 : vector<2x32xf32>
    %c6_61 = arith.constant 6 : index
    %c0_62 = arith.constant 0 : index
    %c0_63 = arith.constant 0 : index
    %162 = vector.load %arg6[%c6_61, %c0_62, %c0_63] : memref<8x2x32xf32, #tpu.memory_space<vmem>>, vector<1x2x32xf32>
    %163 = vector.shape_cast %162 : vector<1x2x32xf32> to vector<2x32xf32>
    %164 = vector.shape_cast %161 : vector<2x32xf32> to vector<1x2x32xf32>
    tpu.vector_store %arg6[%c6_61, %c0_62, %c0_63], %164 {strides = array<i32>} : memref<8x2x32xf32, #tpu.memory_space<vmem>>, vector<1x2x32xf32>,
    %c7 = arith.constant 7 : index
    %c0_64 = arith.constant 0 : index
    %c0_65 = arith.constant 0 : index
    %165 = vector.load %arg9[%c7, %c0_64, %c0_65] : memref<8x2x128xf32, #tpu.memory_space<vmem>>, vector<1x2x128xf32>
    %166 = vector.shape_cast %165 : vector<1x2x128xf32> to vector<2x128xf32>
    %cst_66 = arith.constant dense<0.000000e+00> : vector<2x128xf32>
    %167 = tpu.matmul %161, %8, %cst_66 {dimension_numbers = #tpu.dot_dimension_numbers<[1], [0], [0], [1], [0, 0, 1, 1], [], []>} : vector<2x32xf32>, vector<32x128xf32>, vector<2x128xf32> -> vector<2x128xf32>
    %168 = arith.addf %166, %167 : vector<2x128xf32>
    %169 = arith.negf %168 : vector<2x128xf32>
    %170 = math.exp %169 : vector<2x128xf32>
    %cst_67 = arith.constant 1.000000e+00 : f32
    %171 = vector.broadcast %cst_67 : f32 to vector<2x128xf32>
    %172 = arith.addf %171, %170 : vector<2x128xf32>
    %173 = arith.divf %171, %172 : vector<2x128xf32>
    %174 = math.tanh %168 : vector<2x128xf32>
    %175 = vector.extract_strided_slice %173 {offsets = [0, 0], sizes = [2, 32], strides = [1, 1]} : vector<2x128xf32> to vector<2x32xf32>
    %176 = vector.extract_strided_slice %173 {offsets = [0, 32], sizes = [2, 32], strides = [1, 1]} : vector<2x128xf32> to vector<2x32xf32>
    %177 = vector.extract_strided_slice %174 {offsets = [0, 64], sizes = [2, 32], strides = [1, 1]} : vector<2x128xf32> to vector<2x32xf32>
    %178 = vector.extract_strided_slice %173 {offsets = [0, 96], sizes = [2, 32], strides = [1, 1]} : vector<2x128xf32> to vector<2x32xf32>
    %179 = arith.mulf %176, %159 : vector<2x32xf32>
    %180 = arith.mulf %175, %177 : vector<2x32xf32>
    %181 = arith.addf %179, %180 : vector<2x32xf32>
    %182 = math.tanh %181 : vector<2x32xf32>
    %183 = arith.mulf %178, %182 : vector<2x32xf32>
    %c7_68 = arith.constant 7 : index
    %c0_69 = arith.constant 0 : index
    %c0_70 = arith.constant 0 : index
    %184 = vector.load %arg6[%c7_68, %c0_69, %c0_70] : memref<8x2x32xf32, #tpu.memory_space<vmem>>, vector<1x2x32xf32>
    %185 = vector.shape_cast %184 : vector<1x2x32xf32> to vector<2x32xf32>
    %186 = vector.shape_cast %183 : vector<2x32xf32> to vector<1x2x32xf32>
    tpu.vector_store %arg6[%c7_68, %c0_69, %c0_70], %186 {strides = array<i32>} : memref<8x2x32xf32, #tpu.memory_space<vmem>>, vector<1x2x32xf32>,
    %c0_71 = arith.constant 0 : index
    %c0_72 = arith.constant 0 : index
    %187 = vector.load %arg7[%c0_71, %c0_72] : memref<2x32xf32, #tpu.memory_space<vmem>>, vector<2x32xf32>
    tpu.vector_store %arg7[%c0_71, %c0_72], %183 {strides = array<i32>} : memref<2x32xf32, #tpu.memory_space<vmem>>, vector<2x32xf32>,
    %c0_73 = arith.constant 0 : index
    %c0_74 = arith.constant 0 : index
    %188 = vector.load %arg8[%c0_73, %c0_74] : memref<2x32xf32, #tpu.memory_space<vmem>>, vector<2x32xf32>
    tpu.vector_store %arg8[%c0_73, %c0_74], %181 {strides = array<i32>} : memref<2x32xf32, #tpu.memory_space<vmem>>, vector<2x32xf32>,
    return
  }
}

</mosaic_0001>

<bundles_post_ra>
// kernel: tpu_custom_call.1
= control target key start
LH: loop header
LB: loop body
LE: loop exit
PB: predicated region body
PF: predicated region fallthrough
CT: control target
= control target key end

     0   :  { %14 = vsyncpa [#allocation4], 0  ;;  %s1766_s0 = inlined_call_operand.vmem [shape: f32[16,4], index: 0, kind: input, shape index: {}]   ;;  %s1767_s1 = inlined_call_operand.vmem [shape: f32[2,32], index: 1, kind: input, shape index: {}]   ;;  %s1768_s2 = inlined_call_operand.hbm [shape: f32[2,32], index: 2, kind: input, shape index: {}]   ;;  %s1769_s3 = inlined_call_operand.hbm [shape: f32[4,128], index: 3, kind: input, shape index: {}]   ;;  %s1770_s4 = inlined_call_operand.vmem [shape: f32[32,128], index: 4, kind: input, shape index: {}]   ;;  %s1771_s5 = inlined_call_operand.vmem [shape: f32[1,128], index: 5, kind: input, shape index: {}]   ;;  %s1772_s6 = inlined_call_operand.hbm [shape: f32[8,2,32], index: 6, kind: output, shape index: {0}]   ;;  %s1773_s7 = inlined_call_operand.hbm [shape: f32[2,32], index: 7, kind: output, shape index: {1}]   ;;  %s1774_s8 = inlined_call_operand.hbm [shape: f32[2,32], index: 8, kind: output, shape index: {2}]  }
   0x1   :  { %15 = vsyncpa [#allocation7], 0 }
   0x2   :  { %16 = vsyncpa [#allocation5], 0 }
   0x3   :  { %17 = vsyncpa [#allocation10], 0  ;;  %s1505_s27 = smov [#allocation3]   ;;  %s1506_s29 = smov [#allocation6]  }
   0x4   :  { %s28_s28 = sshll.u32 %s1505_s27, 4  ;;  %s38_s30 = sshll.u32 %s1506_s29, 4  ;;  %s29_s28 = int_to_ptr.vmem [resolvable:$true] %s28_s28  ;;  %s39_s30 = int_to_ptr.vmem [resolvable:$true] %s38_s30 }
   0x5   :  { %s1387_s11 = scalar_lea.hbm %s1768_s2, 32 }
   0x6   :  { %p1388_p0 = scmp.ne.s32.totalorder %s1768_s2, %s1387_s11  ;;  %p1391_p1 = scmp.lt.u32.totalorder %s1387_s11, %s1768_s2 }
   0x8   :  { %p1393_p2 = pnand %p1391_p1, %p1388_p0 }
   0xa   :  { %1396 = shalt.err (!%p1393_p2)
}
   0xb   :  { %s1397_s16 = scalar_lea.vmem %s29_s28, 32  ;;  %p1402_p4 = scmp.lt.s32.totalorder %s29_s28, %s29_s28 }
   0xc   :  { %p1398_p3 = scmp.ne.s32.totalorder %s29_s28, %s1397_s16  ;;  %p1403_p5 = scmp.lt.s32.totalorder %s1397_s16, %s1397_s16 }
   0xe   :  { %p1404_p6 = por %p1403_p5, %p1402_p4 }
  0x10   :  { %p1405_p7 = pnand %p1404_p6, %p1398_p3 }
  0x12   :  { %1408 = shalt.err (!%p1405_p7)
}
  0x13   :  { %31 = dma.hbm_to_vmem [thread:$0]  %s1768_s2, 32, %s29_s28, [#allocation4]  }
  0x14   :  { %s1409_s21 = scalar_lea.hbm %s1769_s3, 64 }
  0x15   :  { %p1410_p8 = scmp.ne.s32.totalorder %s1769_s3, %s1409_s21  ;;  %p1413_p9 = scmp.lt.u32.totalorder %s1409_s21, %s1769_s3 }
  0x17   :  { %p1415_p10 = pnand %p1413_p9, %p1410_p8 }
  0x19   :  { %1418 = shalt.err (!%p1415_p10)
}
  0x1a   :  { %s1419_s26 = scalar_lea.vmem %s39_s30, 64  ;;  %p1424_p12 = scmp.lt.s32.totalorder %s39_s30, %s39_s30 }
  0x1b   :  { %p1420_p11 = scmp.ne.s32.totalorder %s39_s30, %s1419_s26  ;;  %p1425_p13 = scmp.lt.s32.totalorder %s1419_s26, %s1419_s26 }
  0x1d   :  { %p1426_p0 = por %p1425_p13, %p1424_p12 }
  0x1f   :  { %p1427_p1 = pnand %p1426_p0, %p1420_p11 }
  0x21   :  { %1430 = shalt.err (!%p1427_p1)
}
  0x22   :  { %41 = dma.hbm_to_vmem [thread:$0]  %s1769_s3, 64, %s39_s30, [#allocation7]  }
  0x23   :  { %1497 = dma.done.wait [#allocation4], 32  }
  0x24   :  { %1498 = vsyncadd [#allocation4], 4294967264 }
  0x25   :  { %1499 = dma.done.wait [#allocation7], 64  }
  0x26   :  { %1500 = vsyncadd [#allocation7], 4294967232  ;;  %v1507_v0 = vmov 0.0|0.0   ;;  %vm1508_vm0 = vmmov 0   ;;  %v1509_v1 = vmov 0.0   ;;  %vm69_vm1 = vcmask 1043456  }
  0x27   :  { %1262 = vmatprep.subr.bf16.mxu1 %v1507_v0  ;;  %1182 = vmatprep.mubr.msk.f32.mxu1 %vm1508_vm0, %v1509_v1  ;;  %vm62_vm2 = vcmask 31744   ;;  %v54_v2 = vld [vmem:[#allocation6] sm:$0xf]  ;;  %v52_v3 = vld [vmem:[%s1766_s0] sm:$0xff]  ;;  %v53_v4 = vld [vmem:[%s1766_s0 + $0x8] sm:$0xff]  ;;  %vm207_vm3 = vcmask 261120   ;;  %v154_v14 = vlaneseq }
  0x28   :  { %1169 = vmatprep.subr.msk.mxu0 %vm69_vm1, %v54_v2  ;;  %1171 = vmatprep.mubr.msk.f32.mxu0 %vm62_vm2, %v52_v3  ;;  %v200_v5 = vld [vmem:[%s1770_s4] sm:$0xff]  ;;  %v201_v6 = vld [vmem:[%s1770_s4 + $0x8] sm:$0xff]  ;;  %v202_v7 = vld [vmem:[%s1770_s4 + $0x10] sm:$0xff]  ;;  %v1510_v12 = vmov 1983009808   ;;  %s1512_s18 = smov 32  }
  0x29   :  { %1170 = vmatpush3.msk.msra.mxu0 %vm69_vm1, %v54_v2  ;;  %v1605_v8 = vpack.c.bf16 %v201_v6, %v200_v5  ;;  %v203_v9 = vld [vmem:[%s1770_s4 + $0x18] sm:$0xff]  ;;  %v204_v11 = vld [vmem:[%s1767_s1] sm:$0x3]  ;;  %v152_v13 = vunpack.c.l.s4 %v1510_v12  ;;  %v155_v16 = vshrl.u32 %v154_v14, 7  ;;  %v205_v38 = vld [vmem:[#allocation3] sm:$0x3] }
  0x2a   :  { %1172 = vmatmul.mubr.msk.f32.vlgmr.msra.gmra.mrb[0].mxu0 %vm62_vm2, %v53_v4  ;;  %1268 = vmatprep.subr.bf16.mxu0 %v1507_v0  ;;  %v1612_v10 = vpack.c.bf16 %v203_v9, %v202_v7  ;;  %v1102_v17 = vld [vmem:[%s1771_s5] ss:$0 sm:$0xff]  ;;  %s1511_s5 = smov 64   ;;  %vm314_vm4 = vcmask 254976   ;;  %s1513_s19 = smov 96  }
  0x2b   :  { %1264 = vmatpush3.bf16.msra.mxu1 %v1605_v8  ;;  %1270 = vmatpush3.bf16.msra.mxu0 %v1605_v8  ;;  %v153_v15 = vunpack.c.0.s8 %v152_v13  ;;  %s1514_s20 = smov [#allocation9]   ;;  %s1515_s22 = smov [#allocation8]  }
  0x2c   :  { %1265 = vmatprep.subr.bf16.mxu1 %v1507_v0  ;;  %1271 = vmatprep.subr.bf16.mxu0 %v1507_v0  ;;  %s1075_s21 = sshll.u32 %s1514_s20, 4  ;;  %s1062_s23 = sshll.u32 %s1515_s22, 4  ;;  %s1076_s21 = int_to_ptr.vmem [resolvable:$true] %s1075_s21  ;;  %s1712_s23 = int_to_ptr.vmem [resolvable:$true] %s1062_s23 }
  0x2d   :  { %1193 = vmatprep.mubr.msk.f32.mxu0 %vm1508_vm0, %v1509_v1  ;;  %v156_v18 = vsub.s32 %v153_v15, %v155_v16  ;;  %s1516_s24 = smov [#allocation11]   ;;  %s1431_s26 = scalar_lea.vmem %s1076_s21, 32 }
  0x2e   :  { %s1085_s25 = sshll.u32 %s1516_s24, 4  ;;  %p1432_p2 = scmp.ne.s32.totalorder %s1076_s21, %s1431_s26  ;;  %s1716_s25 = int_to_ptr.vmem [resolvable:$true] %s1085_s25 }
  0x2f   :  { %1267 = vmatpush3.bf16.msra.mxu1 %v1612_v10  ;;  %1273 = vmatpush3.bf16.msra.mxu0 %v1612_v10  ;;  %p1436_p3 = scmp.lt.s32.totalorder %s1076_s21, %s1076_s21  ;;  %p1437_p4 = scmp.lt.s32.totalorder %s1431_s26, %s1431_s26 }
  0x30   :  { %1274 = vmatprep.subr.bf16.mxu1 %v1507_v0  ;;  %1280 = vmatprep.subr.bf16.mxu0 %v1507_v0 }
  0x31   :  { %p1438_p5 = por %p1437_p4, %p1436_p3 }
  0x32   :  { %1183 = vmatmul.mubr.msk.f32.vlgmr.msra.gmra.mrb[0].mxu1 %vm207_vm3, %v204_v11 }
  0x33   :  { %1276 = vmatpush3.bf16.msra.mxu1 %v1605_v8  ;;  %1204 = vmatprep.mubr.msk.f32.mxu1 %vm1508_vm0, %v1509_v1  ;;  %p1439_p6 = pnand %p1438_p5, %p1432_p2 }
  0x34   :  { %1277 = vmatprep.subr.bf16.mxu1 %v1507_v0 }
  0x37   :  { %1279 = vmatpush3.bf16.msra.mxu1 %v1612_v10 }
  0x38   :  { %1286 = vmatprep.subr.bf16.mxu1 %v1507_v0 }
  0xfd   :  { %v1173_v19 = vpop.f32.mrb[0].mxu0 }
  0xfe   :  { %v145_v20 = vadd.f32 %v1173_v19, %v1102_v17  ;;  %v139_v21 = vpop.f32.mrb[1].mxu0 }
  0xff   :  { %v140_v22 = vadd.f32 %v1102_v17, %v139_v21 }
 0x100   :  { %v167_v23 = vcombine.high %v145_v20, %v145_v20  ;;  %v174_v24 = vrot.slane %v145_v20, %v156_v18  ;;  %1108 = vst.sshfl [vmem:[#allocation2 + $0x8] sm:$0x3 pattern:$0x76325410] %v145_v20 }
 0x101   :  { %v150_v25 = vcombine.high %v140_v22, %v140_v22  ;;  %v157_v26 = vrot.slane %v140_v22, %v156_v18  ;;  %1106 = vst.sshfl [vmem:[#allocation2] sm:$0x3 pattern:$0x76325410] %v140_v22 }
 0x102   :  { %v181_v27 = vrot.slane %v167_v23, %v156_v18  ;;  %v182_v28 = vcombine.high %v174_v24, %v174_v24  ;;  %1109 = vst.sshfl [vmem:[#allocation2 + $0xc] sm:$0x3 pattern:$0x76325410] %v167_v23 }
 0x103   :  { %v164_v29 = vrot.slane %v150_v25, %v156_v18  ;;  %v165_v30 = vcombine.high %v157_v26, %v157_v26  ;;  %1107 = vst.sshfl [vmem:[#allocation2 + $0x4] sm:$0x3 pattern:$0x76325410] %v150_v25 }
 0x104   :  { %v183_v31 = vcombine.high %v181_v27, %v181_v27  ;;  %197 = vst [vmem:[#allocation2 + $0xa] sm:$0x3] %v182_v28 }
 0x105   :  { %v166_v32 = vcombine.high %v164_v29, %v164_v29  ;;  %193 = vst [vmem:[#allocation2 + $0x2] sm:$0x3] %v165_v30  ;;  %v277_v33 = vpop.f32.mrb[0].mxu1 }
 0x106   :  { %199 = vst [vmem:[#allocation2 + $0xe] sm:$0x3] %v183_v31  ;;  %v1184_v34 = vpop.f32.mrb[1].mxu1 }
 0x107   :  { %195 = vst [vmem:[#allocation2 + $0x6] sm:$0x3] %v166_v32 }
 0x108   :  { %v206_v35 = vld [vmem:[#allocation2] sm:$0x3] }
 0x109   :  { %v281_v36 = vadd.f32 %v277_v33, %v206_v35 }
 0x10a   :  { %v422_v11 = vld [vmem:[#allocation2 + $0x4] sm:$0x3] }
 0x10b   :  { %1323 = vtanh.f32 %v281_v36  ;;  %v1111_v39 = vmul.f32 -1.442695, %v281_v36 }
 0x10c   :  { %v317_v53 = vld [vmem:[#allocation2 + $0x2] sm:$0x3] }
 0x10d   :  { %1325 = vpow2.f32 %v1111_v39 }
 0x10e   :  { %v527_v29 = vld [vmem:[#allocation2 + $0x6] sm:$0x3] }
 0x115   :  { %v1324_v37 = vpop.eup %1323 }
 0x116   :  { %295 = vrot.lane.b32.xlu0 %v1324_v37, %s1511_s5 }
 0x117   :  { %v1326_v40 = vpop.eup %1325 }
 0x118   :  { %v285_v41 = vadd.f32 1.0, %v1326_v40 }
 0x11a   :  { %290 = vrot.lane.b32.xlu0 %v205_v38, %s1512_s18  ;;  %1327 = vrcp.f32 %v285_v41 }
 0x124   :  { %v1328_v42 = vpop.eup %1327 }
 0x188   :  { %v296_v43 = vpop.permute.xlu0 %295 }
 0x189   :  { %v298_v44 = vmul.f32 %v1328_v42, %v296_v43 }
 0x18b   :  { %300 = vrot.lane.b32.xlu1 %v298_v44, %s1512_s18 }
 0x18c   :  { %v291_v45 = vpop.permute.xlu0 %290 }
 0x18d   :  { %v293_v46 = vmul.f32 %v1328_v42, %v291_v45 }
 0x1fd   :  { %v301_v47 = vpop.permute.xlu1 %300 }
 0x1fe   :  { %v303_v48 = vadd.f32 %v301_v47, %v293_v46  ;;  %v632_v47 = vld [vmem:[#allocation2 + $0x8] sm:$0x3] }
 0x200   :  { %1329 = vtanh.f32 %v303_v48 }
 0x20a   :  { %v1330_v49 = vpop.eup %1329 }
 0x20b   :  { %306 = vrot.lane.b32.xlu1 %v1330_v49, %s1511_s5 }
 0x27d   :  { %v307_v50 = vpop.permute.xlu1 %306 }
 0x27e   :  { %v309_v51 = vmul.f32 %v1328_v42, %v307_v50 }
 0x280   :  { %311 = vrot.lane.b32.xlu0 %v309_v51, %s1512_s18 }
 0x2f2   :  { %v312_v52 = vpop.permute.xlu0 %311 }
 0x2f3   :  { %315 = vst.msk [vmem:[#allocation8] sm:$0x3] %vm314_vm4, %v312_v52  ;;  %1194 = vmatmul.mubr.msk.f32.vlgmr.msra.gmra.mrb[2].mxu0 %vm207_vm3, %v312_v52 }
 0x2f4   :  { %1282 = vmatpush3.bf16.msra.mxu0 %v1605_v8  ;;  %1215 = vmatprep.mubr.msk.f32.mxu0 %vm1508_vm0, %v1509_v1 }
 0x2f5   :  { %1283 = vmatprep.subr.bf16.mxu0 %v1507_v0 }
 0x2f8   :  { %1285 = vmatpush3.bf16.msra.mxu0 %v1612_v10 }
 0x2f9   :  { %1292 = vmatprep.subr.bf16.mxu0 %v1507_v0 }
 0x3c6   :  { %v386_v54 = vpop.f32.mrb[2].mxu0 }
 0x3c7   :  { %v390_v55 = vadd.f32 %v386_v54, %v317_v53  ;;  %v1195_v56 = vpop.f32.mrb[3].mxu0 }
 0x3c9   :  { %1331 = vtanh.f32 %v390_v55  ;;  %v1113_v58 = vmul.f32 -1.442695, %v390_v55 }
 0x3cb   :  { %1333 = vpow2.f32 %v1113_v58 }
 0x3d3   :  { %v1332_v57 = vpop.eup %1331 }
 0x3d4   :  { %400 = vrot.lane.b32.xlu1 %v1332_v57, %s1511_s5 }
 0x3d5   :  { %v1334_v59 = vpop.eup %1333 }
 0x3d6   :  { %v394_v60 = vadd.f32 1.0, %v1334_v59 }
 0x3d8   :  { %1335 = vrcp.f32 %v394_v60 }
 0x3e2   :  { %v1336_v61 = vpop.eup %1335 }
 0x3e3   :  { %v398_v2 = vmul.f32 %v1336_v61, %v303_v48 }
 0x446   :  { %v401_v62 = vpop.permute.xlu1 %400 }
 0x447   :  { %v403_v63 = vmul.f32 %v1336_v61, %v401_v62 }
 0x449   :  { %405 = vrot.lane.b32.xlu0 %v403_v63, %s1512_s18 }
 0x4bb   :  { %v406_v3 = vpop.permute.xlu0 %405 }
 0x4bc   :  { %v408_v4 = vadd.f32 %v406_v3, %v398_v2  ;;  %v737_v3 = vld [vmem:[#allocation2 + $0xa] sm:$0x3] }
 0x4be   :  { %1337 = vtanh.f32 %v408_v4 }
 0x4c8   :  { %v1338_v5 = vpop.eup %1337 }
 0x4c9   :  { %411 = vrot.lane.b32.xlu1 %v1338_v5, %s1511_s5 }
 0x53b   :  { %v412_v6 = vpop.permute.xlu1 %411 }
 0x53c   :  { %v414_v7 = vmul.f32 %v1336_v61, %v412_v6 }
 0x53e   :  { %416 = vrot.lane.b32.xlu0 %v414_v7, %s1512_s18 }
 0x5b0   :  { %v417_v9 = vpop.permute.xlu0 %416 }
 0x5b1   :  { %420 = vst.msk [vmem:[#allocation8 + $0x2] sm:$0x3] %vm314_vm4, %v417_v9  ;;  %1205 = vmatmul.mubr.msk.f32.vlgmr.msra.gmra.mrb[2].mxu1 %vm207_vm3, %v417_v9 }
 0x5b2   :  { %1288 = vmatpush3.bf16.msra.mxu1 %v1605_v8  ;;  %1226 = vmatprep.mubr.msk.f32.mxu1 %vm1508_vm0, %v1509_v1 }
 0x5b3   :  { %1289 = vmatprep.subr.bf16.mxu1 %v1507_v0 }
 0x5b6   :  { %1291 = vmatpush3.bf16.msra.mxu1 %v1612_v10 }
 0x5b7   :  { %1298 = vmatprep.subr.bf16.mxu1 %v1507_v0 }
 0x684   :  { %v491_v12 = vpop.f32.mrb[2].mxu1 }
 0x685   :  { %v495_v13 = vadd.f32 %v491_v12, %v422_v11  ;;  %v1206_v14 = vpop.f32.mrb[3].mxu1 }
 0x687   :  { %1339 = vtanh.f32 %v495_v13  ;;  %v1115_v16 = vmul.f32 -1.442695, %v495_v13 }
 0x689   :  { %1341 = vpow2.f32 %v1115_v16 }
 0x691   :  { %v1340_v15 = vpop.eup %1339 }
 0x692   :  { %505 = vrot.lane.b32.xlu1 %v1340_v15, %s1511_s5 }
 0x693   :  { %v1342_v17 = vpop.eup %1341 }
 0x694   :  { %v499_v18 = vadd.f32 1.0, %v1342_v17 }
 0x696   :  { %1343 = vrcp.f32 %v499_v18 }
 0x6a0   :  { %v1344_v19 = vpop.eup %1343 }
 0x6a1   :  { %v503_v22 = vmul.f32 %v1344_v19, %v408_v4 }
 0x704   :  { %v506_v20 = vpop.permute.xlu1 %505 }
 0x705   :  { %v508_v21 = vmul.f32 %v1344_v19, %v506_v20 }
 0x707   :  { %510 = vrot.lane.b32.xlu0 %v508_v21, %s1512_s18 }
 0x779   :  { %v511_v23 = vpop.permute.xlu0 %510 }
 0x77a   :  { %v513_v24 = vadd.f32 %v511_v23, %v503_v22 }
 0x77c   :  { %1345 = vtanh.f32 %v513_v24 }
 0x786   :  { %v1346_v25 = vpop.eup %1345 }
 0x787   :  { %516 = vrot.lane.b32.xlu1 %v1346_v25, %s1511_s5 }
 0x7f9   :  { %v517_v26 = vpop.permute.xlu1 %516 }
 0x7fa   :  { %v519_v27 = vmul.f32 %v1344_v19, %v517_v26  ;;  %v842_v19 = vld [vmem:[#allocation2 + $0xc] sm:$0x3] }
 0x7fc   :  { %521 = vrot.lane.b32.xlu0 %v519_v27, %s1512_s18 }
 0x86e   :  { %v522_v28 = vpop.permute.xlu0 %521 }
 0x86f   :  { %525 = vst.msk [vmem:[#allocation8 + $0x4] sm:$0x3] %vm314_vm4, %v522_v28  ;;  %1216 = vmatmul.mubr.msk.f32.vlgmr.msra.gmra.mrb[4].mxu0 %vm207_vm3, %v522_v28 }
 0x870   :  { %1294 = vmatpush3.bf16.msra.mxu0 %v1605_v8  ;;  %1237 = vmatprep.mubr.msk.f32.mxu0 %vm1508_vm0, %v1509_v1 }
 0x871   :  { %1295 = vmatprep.subr.bf16.mxu0 %v1507_v0 }
 0x874   :  { %1297 = vmatpush3.bf16.msra.mxu0 %v1612_v10 }
 0x875   :  { %1304 = vmatprep.subr.bf16.mxu0 %v1507_v0 }
 0x942   :  { %v596_v30 = vpop.f32.mrb[4].mxu0 }
 0x943   :  { %v600_v31 = vadd.f32 %v596_v30, %v527_v29  ;;  %v1217_v32 = vpop.f32.mrb[5].mxu0 }
 0x945   :  { %1347 = vtanh.f32 %v600_v31  ;;  %v1117_v34 = vmul.f32 -1.442695, %v600_v31 }
 0x947   :  { %1349 = vpow2.f32 %v1117_v34 }
 0x94f   :  { %v1348_v33 = vpop.eup %1347 }
 0x950   :  { %610 = vrot.lane.b32.xlu1 %v1348_v33, %s1511_s5 }
 0x951   :  { %v1350_v35 = vpop.eup %1349 }
 0x952   :  { %v604_v36 = vadd.f32 1.0, %v1350_v35 }
 0x954   :  { %1351 = vrcp.f32 %v604_v36 }
 0x95e   :  { %v1352_v37 = vpop.eup %1351 }
 0x95f   :  { %v608_v40 = vmul.f32 %v1352_v37, %v513_v24 }
 0x9c2   :  { %v611_v38 = vpop.permute.xlu1 %610 }
 0x9c3   :  { %v613_v39 = vmul.f32 %v1352_v37, %v611_v38 }
 0x9c5   :  { %615 = vrot.lane.b32.xlu0 %v613_v39, %s1512_s18 }
 0xa37   :  { %v616_v41 = vpop.permute.xlu0 %615 }
 0xa38   :  { %v618_v42 = vadd.f32 %v616_v41, %v608_v40 }
 0xa3a   :  { %1353 = vtanh.f32 %v618_v42 }
 0xa44   :  { %v1354_v43 = vpop.eup %1353 }
 0xa45   :  { %621 = vrot.lane.b32.xlu1 %v1354_v43, %s1511_s5 }
 0xab7   :  { %v622_v44 = vpop.permute.xlu1 %621 }
 0xab8   :  { %v624_v45 = vmul.f32 %v1352_v37, %v622_v44  ;;  %v947_v37 = vld [vmem:[#allocation2 + $0xe] sm:$0x3] }
 0xaba   :  { %626 = vrot.lane.b32.xlu0 %v624_v45, %s1512_s18 }
 0xb2c   :  { %v627_v46 = vpop.permute.xlu0 %626 }
 0xb2d   :  { %630 = vst.msk [vmem:[#allocation8 + $0x6] sm:$0x3] %vm314_vm4, %v627_v46  ;;  %1227 = vmatmul.mubr.msk.f32.vlgmr.msra.gmra.mrb[4].mxu1 %vm207_vm3, %v627_v46 }
 0xb2e   :  { %1300 = vmatpush3.bf16.msra.mxu1 %v1605_v8  ;;  %1248 = vmatprep.mubr.msk.f32.mxu1 %vm1508_vm0, %v1509_v1 }
 0xb2f   :  { %1301 = vmatprep.subr.bf16.mxu1 %v1507_v0 }
 0xb32   :  { %1303 = vmatpush3.bf16.msra.mxu1 %v1612_v10 }
 0xc00   :  { %v701_v48 = vpop.f32.mrb[4].mxu1 }
 0xc01   :  { %v705_v49 = vadd.f32 %v701_v48, %v632_v47  ;;  %v1228_v50 = vpop.f32.mrb[5].mxu1 }
 0xc03   :  { %1355 = vtanh.f32 %v705_v49  ;;  %v1119_v52 = vmul.f32 -1.442695, %v705_v49 }
 0xc05   :  { %1357 = vpow2.f32 %v1119_v52 }
 0xc0d   :  { %v1356_v51 = vpop.eup %1355 }
 0xc0e   :  { %715 = vrot.lane.b32.xlu1 %v1356_v51, %s1511_s5 }
 0xc0f   :  { %v1358_v53 = vpop.eup %1357 }
 0xc10   :  { %v709_v54 = vadd.f32 1.0, %v1358_v53 }
 0xc12   :  { %1359 = vrcp.f32 %v709_v54 }
 0xc1c   :  { %v1360_v55 = vpop.eup %1359 }
 0xc1d   :  { %v713_v58 = vmul.f32 %v1360_v55, %v618_v42 }
 0xc80   :  { %v716_v56 = vpop.permute.xlu1 %715 }
 0xc81   :  { %v718_v57 = vmul.f32 %v1360_v55, %v716_v56 }
 0xc83   :  { %720 = vrot.lane.b32.xlu0 %v718_v57, %s1512_s18 }
 0xcf5   :  { %v721_v59 = vpop.permute.xlu0 %720 }
 0xcf6   :  { %v723_v60 = vadd.f32 %v721_v59, %v713_v58 }
 0xcf8   :  { %1361 = vtanh.f32 %v723_v60 }
 0xd02   :  { %v1362_v61 = vpop.eup %1361 }
 0xd03   :  { %726 = vrot.lane.b32.xlu1 %v1362_v61, %s1511_s5 }
 0xd75   :  { %v727_v62 = vpop.permute.xlu1 %726 }
 0xd76   :  { %v729_v63 = vmul.f32 %v1360_v55, %v727_v62 }
 0xd78   :  { %731 = vrot.lane.b32.xlu0 %v729_v63, %s1512_s18 }
 0xdea   :  { %v732_v2 = vpop.permute.xlu0 %731 }
 0xdeb   :  { %735 = vst.msk [vmem:[#allocation8 + $0x8] sm:$0x3] %vm314_vm4, %v732_v2  ;;  %1238 = vmatmul.mubr.msk.f32.vlgmr.msra.gmra.mrb[6].mxu0 %vm207_vm3, %v732_v2 }
 0xdec   :  { %1306 = vmatpush3.bf16.msra.mxu0 %v1605_v8  ;;  %1259 = vmatprep.mubr.msk.f32.mxu0 %vm1508_vm0, %v1509_v1 }
 0xded   :  { %1307 = vmatprep.subr.bf16.mxu0 %v1507_v0 }
 0xdf0   :  { %1309 = vmatpush3.bf16.msra.mxu0 %v1612_v10 }
 0xebe   :  { %v806_v4 = vpop.f32.mrb[6].mxu0 }
 0xebf   :  { %v810_v5 = vadd.f32 %v806_v4, %v737_v3  ;;  %v1239_v6 = vpop.f32.mrb[7].mxu0 }
 0xec1   :  { %1363 = vtanh.f32 %v810_v5  ;;  %v1121_v9 = vmul.f32 -1.442695, %v810_v5 }
 0xec3   :  { %1365 = vpow2.f32 %v1121_v9 }
 0xecb   :  { %v1364_v7 = vpop.eup %1363 }
 0xecc   :  { %820 = vrot.lane.b32.xlu1 %v1364_v7, %s1511_s5 }
 0xecd   :  { %v1366_v11 = vpop.eup %1365 }
 0xece   :  { %v814_v12 = vadd.f32 1.0, %v1366_v11 }
 0xed0   :  { %1367 = vrcp.f32 %v814_v12 }
 0xeda   :  { %v1368_v8 = vpop.eup %1367 }
 0xedb   :  { %v818_v0 = vmul.f32 %v1368_v8, %v723_v60 }
 0xf3e   :  { %v821_v13 = vpop.permute.xlu1 %820 }
 0xf3f   :  { %v823_v1 = vmul.f32 %v1368_v8, %v821_v13 }
 0xf41   :  { %825 = vrot.lane.b32.xlu0 %v823_v1, %s1512_s18 }
 0xfb3   :  { %v826_v10 = vpop.permute.xlu0 %825 }
 0xfb4   :  { %v828_v14 = vadd.f32 %v826_v10, %v818_v0 }
 0xfb6   :  { %1369 = vtanh.f32 %v828_v14 }
 0xfc0   :  { %v1370_v15 = vpop.eup %1369 }
 0xfc1   :  { %831 = vrot.lane.b32.xlu1 %v1370_v15, %s1511_s5 }
0x1033   :  { %v832_v16 = vpop.permute.xlu1 %831 }
0x1034   :  { %v834_v17 = vmul.f32 %v1368_v8, %v832_v16 }
0x1036   :  { %836 = vrot.lane.b32.xlu0 %v834_v17, %s1512_s18 }
0x10a8   :  { %v837_v18 = vpop.permute.xlu0 %836 }
0x10a9   :  { %840 = vst.msk [vmem:[#allocation8 + $0xa] sm:$0x3] %vm314_vm4, %v837_v18  ;;  %1249 = vmatmul.mubr.msk.f32.vlgmr.msra.gmra.mrb[6].mxu1 %vm207_vm3, %v837_v18 }
0x117c   :  { %v911_v20 = vpop.f32.mrb[6].mxu1 }
0x117d   :  { %v915_v21 = vadd.f32 %v911_v20, %v842_v19  ;;  %v1250_v22 = vpop.f32.mrb[7].mxu1 }
0x117f   :  { %1371 = vtanh.f32 %v915_v21  ;;  %v1123_v24 = vmul.f32 -1.442695, %v915_v21 }
0x1181   :  { %1373 = vpow2.f32 %v1123_v24 }
0x1189   :  { %v1372_v23 = vpop.eup %1371 }
0x118a   :  { %925 = vrot.lane.b32.xlu1 %v1372_v23, %s1511_s5 }
0x118b   :  { %v1374_v25 = vpop.eup %1373 }
0x118c   :  { %v919_v26 = vadd.f32 1.0, %v1374_v25 }
0x118e   :  { %1375 = vrcp.f32 %v919_v26 }
0x1198   :  { %v1376_v27 = vpop.eup %1375 }
0x1199   :  { %v923_v30 = vmul.f32 %v1376_v27, %v828_v14 }
0x11fc   :  { %v926_v28 = vpop.permute.xlu1 %925 }
0x11fd   :  { %v928_v29 = vmul.f32 %v1376_v27, %v926_v28 }
0x11ff   :  { %930 = vrot.lane.b32.xlu0 %v928_v29, %s1512_s18 }
0x1271   :  { %v931_v31 = vpop.permute.xlu0 %930 }
0x1272   :  { %v933_v32 = vadd.f32 %v931_v31, %v923_v30 }
0x1274   :  { %1377 = vtanh.f32 %v933_v32 }
0x127e   :  { %v1378_v33 = vpop.eup %1377 }
0x127f   :  { %936 = vrot.lane.b32.xlu1 %v1378_v33, %s1511_s5 }
0x12f1   :  { %v937_v34 = vpop.permute.xlu1 %936 }
0x12f2   :  { %v939_v35 = vmul.f32 %v1376_v27, %v937_v34 }
0x12f4   :  { %941 = vrot.lane.b32.xlu0 %v939_v35, %s1512_s18 }
0x1366   :  { %v942_v36 = vpop.permute.xlu0 %941 }
0x1367   :  { %945 = vst.msk [vmem:[#allocation8 + $0xc] sm:$0x3] %vm314_vm4, %v942_v36  ;;  %1260 = vmatmul.mubr.msk.f32.vlgmr.msra.gmra.mrb[8].mxu0 %vm207_vm3, %v942_v36 }
0x143a   :  { %v1016_v38 = vpop.f32.mrb[8].mxu0 }
0x143b   :  { %v1020_v39 = vadd.f32 %v1016_v38, %v947_v37  ;;  %v1261_v40 = vpop.f32.mrb[9].mxu0 }
0x143d   :  { %1379 = vtanh.f32 %v1020_v39  ;;  %v1125_v42 = vmul.f32 -1.442695, %v1020_v39 }
0x143f   :  { %1381 = vpow2.f32 %v1125_v42 }
0x1447   :  { %v1380_v41 = vpop.eup %1379 }
0x1448   :  { %1030 = vrot.lane.b32.xlu1 %v1380_v41, %s1511_s5 }
0x1449   :  { %v1382_v43 = vpop.eup %1381 }
0x144a   :  { %v1024_v44 = vadd.f32 1.0, %v1382_v43 }
0x144c   :  { %1383 = vrcp.f32 %v1024_v44 }
0x1456   :  { %v1384_v45 = vpop.eup %1383 }
0x1457   :  { %v1028_v48 = vmul.f32 %v1384_v45, %v933_v32 }
0x14ba   :  { %v1031_v46 = vpop.permute.xlu1 %1030 }
0x14bb   :  { %v1033_v47 = vmul.f32 %v1384_v45, %v1031_v46 }
0x14bd   :  { %1035 = vrot.lane.b32.xlu0 %v1033_v47, %s1512_s18 }
0x152f   :  { %v1036_v49 = vpop.permute.xlu0 %1035 }
0x1530   :  { %v1038_v50 = vadd.f32 %v1036_v49, %v1028_v48 }
0x1532   :  { %1385 = vtanh.f32 %v1038_v50 }
0x153c   :  { %v1386_v51 = vpop.eup %1385 }
0x153d   :  { %1041 = vrot.lane.b32.xlu1 %v1386_v51, %s1511_s5 }
0x1541   :  { %1053 = vrot.lane.b32.xlu1 %v1038_v50, %s1513_s19 }
0x15af   :  { %v1042_v52 = vpop.permute.xlu1 %1041 }
0x15b0   :  { %v1044_v53 = vmul.f32 %v1384_v45, %v1042_v52 }
0x15b2   :  { %1046 = vrot.lane.b32.xlu0 %v1044_v53, %s1512_s18 }
0x15b3   :  { %v1054_v54 = vpop.permute.xlu1 %1053 }
0x15b4   :  { %1056 = vst.msk [vmem:[#allocation11] sm:$0x3] %vm314_vm4, %v1054_v54 }
0x1624   :  { %v1047_v55 = vpop.permute.xlu0 %1046 }
0x1625   :  { %1050 = vst.msk [vmem:[#allocation8 + $0xe] sm:$0x3] %vm314_vm4, %v1047_v55  ;;  %1051 = vst.msk [vmem:[#allocation9] sm:$0x3] %vm314_vm4, %v1047_v55 }
0x1626   :  { %1442 = shalt.err (!%p1439_p6)
}
0x1627   :  { %s1443_s28 = scalar_lea.hbm %s1773_s7, 32 }
0x1628   :  { %p1444_p7 = scmp.ne.s32.totalorder %s1773_s7, %s1443_s28  ;;  %p1447_p8 = scmp.lt.u32.totalorder %s1443_s28, %s1773_s7 }
0x162a   :  { %p1449_p9 = pnand %p1447_p8, %p1444_p7 }
0x162c   :  { %1452 = shalt.err (!%p1449_p9)
}
0x162d   :  { %1078 = dma.vmem_to_hbm [thread:$0]  %s1076_s21, 32, %s1773_s7, [#allocation10]  }
0x162e   :  { %s1453_s12 = scalar_lea.vmem %s1712_s23, 256  ;;  %p1458_p11 = scmp.lt.s32.totalorder %s1712_s23, %s1712_s23 }
0x162f   :  { %p1454_p10 = scmp.ne.s32.totalorder %s1712_s23, %s1453_s12  ;;  %p1459_p12 = scmp.lt.s32.totalorder %s1453_s12, %s1453_s12 }
0x1631   :  { %p1460_p13 = por %p1459_p12, %p1458_p11 }
0x1633   :  { %p1461_p0 = pnand %p1460_p13, %p1454_p10 }
0x1635   :  { %1464 = shalt.err (!%p1461_p0)
}
0x1636   :  { %s1465_s15 = scalar_lea.hbm %s1772_s6, 256 }
0x1637   :  { %p1466_p1 = scmp.ne.s32.totalorder %s1772_s6, %s1465_s15  ;;  %p1469_p2 = scmp.lt.u32.totalorder %s1465_s15, %s1772_s6 }
0x1639   :  { %p1471_p3 = pnand %p1469_p2, %p1466_p1 }
0x163b   :  { %1474 = shalt.err (!%p1471_p3)
}
0x163c   :  { %s1517_s7 = smov 2   ;;  %s1475_s19 = scalar_lea.vmem %s1716_s25, 32 }
0x163d   :  { %1068 = dma.vmem_to_hbm [thread:$0]  %s1712_s23, 256, %s1772_s6, [#allocation5], %s1512_s18, %s1512_s18, %s1517_s7  }
0x163e   :  { %p1476_p4 = scmp.ne.s32.totalorder %s1716_s25, %s1475_s19  ;;  %p1480_p5 = scmp.lt.s32.totalorder %s1716_s25, %s1716_s25 }
0x163f   :  { %p1481_p6 = scmp.lt.s32.totalorder %s1475_s19, %s1475_s19 }
0x1641   :  { %p1482_p7 = por %p1481_p6, %p1480_p5 }
0x1643   :  { %p1483_p8 = pnand %p1482_p7, %p1476_p4 }
0x1645   :  { %1486 = shalt.err (!%p1483_p8)
}
0x1646   :  { %s1487_s22 = scalar_lea.hbm %s1774_s8, 32 }
0x1647   :  { %p1488_p9 = scmp.ne.s32.totalorder %s1774_s8, %s1487_s22  ;;  %p1491_p10 = scmp.lt.u32.totalorder %s1487_s22, %s1774_s8 }
0x1649   :  { %p1493_p11 = pnand %p1491_p10, %p1488_p9 }
0x164b   :  { %1496 = shalt.err (!%p1493_p11)
}
0x164c   :  { %1088 = dma.vmem_to_hbm [thread:$0]  %s1716_s25, 32, %s1774_s8, [#allocation10]  }
0x164d   :  { %1501 = dma.done.wait [#allocation5], 256  }
0x164e   :  { %1502 = vsyncadd [#allocation5], 4294967040 }
0x164f   :  { %1503 = dma.done.wait [#allocation10], 64  }
0x1650   :  { %1504 = vsyncadd [#allocation10], 4294967232 }
0x1651   :  { %1098 = vsyncpa [#allocation4], 1 }
0x1652   :  { %1099 = vsyncpa [#allocation7], 1 }
0x1653   :  { %1100 = vsyncpa [#allocation5], 1 }
0x1654   :  { %1101 = vsyncpa [#allocation10], 1 }

</bundles_post_ra>
